<compile_context>
chip_gen: v6e
topology: v6e:2x2x1
jax: 0.10.0
libtpu: 0.0.40
codegen_flags: <defaults>
</compile_context>

<pallas_src>
import jax
import jax.numpy as jnp
from jax.experimental import pallas as pl
from jax.experimental.pallas import tpu as pltpu


def _encoder_y_kernel(x_ref, m1_w_ref, m1_b_ref, v1_w_ref, v1_b_ref,
                      v2_w_ref, v2_b_ref, mean_ref, std_ref):
    x = x_ref[...]                                              # [TB, 4]

    # mean_y = x @ m1_w + m1_b
    mean_ref[...] = (
        jnp.dot(x, m1_w_ref[...], preferred_element_type=jnp.float32)
        + m1_b_ref[...]
    )

    # std_y = exp(tanh(x @ v1_w + v1_b) @ v2_w + v2_b)
    h = jnp.tanh(
        jnp.dot(x, v1_w_ref[...], preferred_element_type=jnp.float32)
        + v1_b_ref[...]
    )
    std_ref[...] = jnp.exp(
        jnp.dot(h, v2_w_ref[...], preferred_element_type=jnp.float32)
        + v2_b_ref[...]
    )


def _round_up(x, m):
    return ((x + m - 1) // m) * m


def _choose_tile_b(B, max_tile_b):
    """Batch tile: big (amortize grid-step overhead), 8-aligned sublanes,
    and >= 2 tiles for larger B so v7x's two TensorCores both get work."""
    if B <= 256:
        return B                       # single block; dims equal the full array dims
    return min(_round_up(max_tile_b, 8), _round_up(pl.cdiv(B, 2), 8))


def encoder_y_forward(ycas, params, *, max_tile_b=4096):
    """ycas: [B, 4] float32.  Returns (mean_y, std_y), each [B, U_y] float32."""
    B, in_dim = ycas.shape
    U_y = params["m1_w"].shape[1]
    hid = params["v1_w"].shape[1]

    tile_b = _choose_tile_b(B, max_tile_b)
    n_tiles = pl.cdiv(B, tile_b)       # ragged last block OK: OOB writes discarded

    const = lambda i: (0, 0)           # weights/biases stay VMEM-resident

    mean_y, std_y = pl.pallas_call(
        _encoder_y_kernel,
        out_shape=(
            jax.ShapeDtypeStruct((B, U_y), jnp.float32),
            jax.ShapeDtypeStruct((B, U_y), jnp.float32),
        ),
        grid=(n_tiles,),
        in_specs=[
            pl.BlockSpec((tile_b, in_dim), lambda i: (i, 0)),   # streamed x tiles
            pl.BlockSpec((in_dim, U_y), const),                 # m1_w
            pl.BlockSpec((1, U_y), const),                      # m1_b
            pl.BlockSpec((in_dim, hid), const),                 # v1_w
            pl.BlockSpec((1, hid), const),                      # v1_b
            pl.BlockSpec((hid, U_y), const),                    # v2_w
            pl.BlockSpec((1, U_y), const),                      # v2_b
        ],
        out_specs=(
            pl.BlockSpec((tile_b, U_y), lambda i: (i, 0)),      # mean_y
            pl.BlockSpec((tile_b, U_y), lambda i: (i, 0)),      # std_y
        ),
        compiler_params=pltpu.CompilerParams(
            dimension_semantics=("parallel",),      # shards tiles across TCs on v7x
            vmem_limit_bytes=32 * 1024 * 1024,      # ample headroom on all generations
        ),
    )(ycas, params["m1_w"], params["m1_b"], params["v1_w"], params["v1_b"],
      params["v2_w"], params["v2_b"])

    return mean_y, std_y


def init_params(key, U_y_dim, hid_dim=5, in_dim=4):
    """Deterministic synthetic init (PyTorch-style uniform bounds); v2 bias = 1.0."""
    k = jax.random.split(key, 6)

    def lin(kw, kb, fan_in, fan_out):
        bound = 1.0 / jnp.sqrt(fan_in)
        w = jax.random.uniform(kw, (fan_in, fan_out), jnp.float32, -bound, bound)
        b = jax.random.uniform(kb, (1, fan_out), jnp.float32, -bound, bound)
        return w, b

    m1_w, m1_b = lin(k[0], k[1], in_dim, U_y_dim)
    v1_w, v1_b = lin(k[2], k[3], in_dim, hid_dim)
    v2_w, _ = lin(k[4], k[5], hid_dim, U_y_dim)
    v2_b = jnp.full((1, U_y_dim), 1.0, jnp.float32)   # self.v2.bias.data.fill_(1.0)

    return {
        "m1_w": m1_w, "m1_b": m1_b,
        "v1_w": v1_w, "v1_b": v1_b,
        "v2_w": v2_w, "v2_b": v2_b,
    }


def _reference(ycas, p):
    mean_y = ycas @ p["m1_w"] + p["m1_b"]
    std_y = jnp.exp(jnp.tanh(ycas @ p["v1_w"] + p["v1_b"]) @ p["v2_w"] + p["v2_b"])
    return mean_y, std_y


if __name__ == "__main__":
    key = jax.random.PRNGKey(0)
    k_x, k_p = jax.random.split(key)

    U_y_dim, hid_dim = 6, 5
    params = init_params(k_p, U_y_dim, hid_dim)

    # Small case (single block, block dims == full array dims).
    B = 8
    ycas = jax.random.normal(k_x, (B, 4), jnp.float32)
    mean_y, std_y = encoder_y_forward(ycas, params)
    jax.block_until_ready((mean_y, std_y))

    ref_mean, ref_std = _reference(ycas, params)
    assert mean_y.shape == (B, U_y_dim) and std_y.shape == (B, U_y_dim)
    assert jnp.allclose(mean_y, ref_mean, atol=1e-5, rtol=1e-5)
    assert jnp.allclose(std_y, ref_std, atol=1e-5, rtol=1e-5)

    # Larger, non-multiple batch exercises the multi-tile grid + ragged last block.
    B2 = 300
    ycas2 = jax.random.normal(jax.random.PRNGKey(1), (B2, 4), jnp.float32)
    mean_y2, std_y2 = encoder_y_forward(ycas2, params)
    jax.block_until_ready((mean_y2, std_y2))

    ref_mean2, ref_std2 = _reference(ycas2, params)
    assert mean_y2.shape == (B2, U_y_dim) and std_y2.shape == (B2, U_y_dim)
    assert jnp.allclose(mean_y2, ref_mean2, atol=1e-5, rtol=1e-5)
    assert jnp.allclose(std_y2, ref_std2, atol=1e-5, rtol=1e-5)

    print("KERNEL_OK")
</pallas_src>

<mosaic_0001>
module attributes {stable_mosaic.version = 11 : i64} {
  func.func @_encoder_y_kernel(%arg0: i32, %arg1: memref<8x4xf32, #tpu.memory_space<vmem>>, %arg2: memref<4x6xf32, #tpu.memory_space<vmem>>, %arg3: memref<1x6xf32, #tpu.memory_space<vmem>>, %arg4: memref<4x5xf32, #tpu.memory_space<vmem>>, %arg5: memref<1x5xf32, #tpu.memory_space<vmem>>, %arg6: memref<5x6xf32, #tpu.memory_space<vmem>>, %arg7: memref<1x6xf32, #tpu.memory_space<vmem>>, %arg8: memref<8x6xf32, #tpu.memory_space<vmem>>, %arg9: memref<8x6xf32, #tpu.memory_space<vmem>>) attributes {dimension_semantics = [#tpu.dimension_semantics<parallel>], iteration_bounds = array<i64: 1>, scalar_prefetch = 0 : i64, scratch_operands = 0 : i64, tpu.core_type = #tpu.core_type<tc>, window_params = [{transform_indices = @transform_0, window_bounds = array<i64: 8, 4>}, {pipeline_mode = #tpu.pipeline_mode<synchronous>, transform_indices = @transform_1, window_bounds = array<i64: 4, 6>}, {pipeline_mode = #tpu.pipeline_mode<synchronous>, transform_indices = @transform_2, window_bounds = array<i64: 1, 6>}, {pipeline_mode = #tpu.pipeline_mode<synchronous>, transform_indices = @transform_3, window_bounds = array<i64: 4, 5>}, {pipeline_mode = #tpu.pipeline_mode<synchronous>, transform_indices = @transform_4, window_bounds = array<i64: 1, 5>}, {pipeline_mode = #tpu.pipeline_mode<synchronous>, transform_indices = @transform_5, window_bounds = array<i64: 5, 6>}, {pipeline_mode = #tpu.pipeline_mode<synchronous>, transform_indices = @transform_6, window_bounds = array<i64: 1, 6>}, {transform_indices = @transform_7, window_bounds = array<i64: 8, 6>}, {transform_indices = @transform_8, window_bounds = array<i64: 8, 6>}]} {
    %c0 = arith.constant 0 : index
    %c0_0 = arith.constant 0 : index
    %0 = vector.load %arg1[%c0, %c0_0] : memref<8x4xf32, #tpu.memory_space<vmem>>, vector<8x4xf32>
    %c0_1 = arith.constant 0 : index
    %c0_2 = arith.constant 0 : index
    %1 = vector.load %arg2[%c0_1, %c0_2] : memref<4x6xf32, #tpu.memory_space<vmem>>, vector<4x6xf32>
    %cst = arith.constant dense<0.000000e+00> : vector<8x6xf32>
    %2 = tpu.matmul %0, %1, %cst {dimension_numbers = #tpu.dot_dimension_numbers<[1], [0], [0], [1], [0, 0, 1, 1], [], []>} : vector<8x4xf32>, vector<4x6xf32>, vector<8x6xf32> -> vector<8x6xf32>
    %c0_3 = arith.constant 0 : index
    %c0_4 = arith.constant 0 : index
    %3 = vector.load %arg3[%c0_3, %c0_4] : memref<1x6xf32, #tpu.memory_space<vmem>>, vector<1x6xf32>
    %4 = vector.broadcast %3 : vector<1x6xf32> to vector<8x6xf32>
    %5 = arith.addf %2, %4 : vector<8x6xf32>
    %c0_5 = arith.constant 0 : index
    %c0_6 = arith.constant 0 : index
    %6 = vector.load %arg8[%c0_5, %c0_6] : memref<8x6xf32, #tpu.memory_space<vmem>>, vector<8x6xf32>
    tpu.vector_store %arg8[%c0_5, %c0_6], %5 {strides = array<i32>} : memref<8x6xf32, #tpu.memory_space<vmem>>, vector<8x6xf32>,
    %c0_7 = arith.constant 0 : index
    %c0_8 = arith.constant 0 : index
    %7 = vector.load %arg4[%c0_7, %c0_8] : memref<4x5xf32, #tpu.memory_space<vmem>>, vector<4x5xf32>
    %cst_9 = arith.constant dense<0.000000e+00> : vector<8x5xf32>
    %8 = tpu.matmul %0, %7, %cst_9 {dimension_numbers = #tpu.dot_dimension_numbers<[1], [0], [0], [1], [0, 0, 1, 1], [], []>} : vector<8x4xf32>, vector<4x5xf32>, vector<8x5xf32> -> vector<8x5xf32>
    %c0_10 = arith.constant 0 : index
    %c0_11 = arith.constant 0 : index
    %9 = vector.load %arg5[%c0_10, %c0_11] : memref<1x5xf32, #tpu.memory_space<vmem>>, vector<1x5xf32>
    %10 = vector.broadcast %9 : vector<1x5xf32> to vector<8x5xf32>
    %11 = arith.addf %8, %10 : vector<8x5xf32>
    %12 = math.tanh %11 : vector<8x5xf32>
    %c0_12 = arith.constant 0 : index
    %c0_13 = arith.constant 0 : index
    %13 = vector.load %arg6[%c0_12, %c0_13] : memref<5x6xf32, #tpu.memory_space<vmem>>, vector<5x6xf32>
    %cst_14 = arith.constant dense<0.000000e+00> : vector<8x6xf32>
    %14 = tpu.matmul %12, %13, %cst_14 {dimension_numbers = #tpu.dot_dimension_numbers<[1], [0], [0], [1], [0, 0, 1, 1], [], []>} : vector<8x5xf32>, vector<5x6xf32>, vector<8x6xf32> -> vector<8x6xf32>
    %c0_15 = arith.constant 0 : index
    %c0_16 = arith.constant 0 : index
    %15 = vector.load %arg7[%c0_15, %c0_16] : memref<1x6xf32, #tpu.memory_space<vmem>>, vector<1x6xf32>
    %16 = vector.broadcast %15 : vector<1x6xf32> to vector<8x6xf32>
    %17 = arith.addf %14, %16 : vector<8x6xf32>
    %18 = math.exp %17 : vector<8x6xf32>
    %c0_17 = arith.constant 0 : index
    %c0_18 = arith.constant 0 : index
    %19 = vector.load %arg9[%c0_17, %c0_18] : memref<8x6xf32, #tpu.memory_space<vmem>>, vector<8x6xf32>
    tpu.vector_store %arg9[%c0_17, %c0_18], %18 {strides = array<i32>} : memref<8x6xf32, #tpu.memory_space<vmem>>, vector<8x6xf32>,
    return
  }
  func.func @transform_0(%arg0: i32) -> (i32, i32) {
    %c0_i32 = arith.constant 0 : i32
    %c0_i32_0 = arith.constant 0 : i32
    return %arg0, %c0_i32 : i32, i32
  }
  func.func @transform_1(%arg0: i32) -> (i32, i32) {
    %c0_i32 = arith.constant 0 : i32
    %c0_i32_0 = arith.constant 0 : i32
    %c0_i32_1 = arith.constant 0 : i32
    return %c0_i32, %c0_i32_0 : i32, i32
  }
  func.func @transform_2(%arg0: i32) -> (i32, i32) {
    %c0_i32 = arith.constant 0 : i32
    %c0_i32_0 = arith.constant 0 : i32
    %c0_i32_1 = arith.constant 0 : i32
    return %c0_i32, %c0_i32_0 : i32, i32
  }
  func.func @transform_3(%arg0: i32) -> (i32, i32) {
    %c0_i32 = arith.constant 0 : i32
    %c0_i32_0 = arith.constant 0 : i32
    %c0_i32_1 = arith.constant 0 : i32
    return %c0_i32, %c0_i32_0 : i32, i32
  }
  func.func @transform_4(%arg0: i32) -> (i32, i32) {
    %c0_i32 = arith.constant 0 : i32
    %c0_i32_0 = arith.constant 0 : i32
    %c0_i32_1 = arith.constant 0 : i32
    return %c0_i32, %c0_i32_0 : i32, i32
  }
  func.func @transform_5(%arg0: i32) -> (i32, i32) {
    %c0_i32 = arith.constant 0 : i32
    %c0_i32_0 = arith.constant 0 : i32
    %c0_i32_1 = arith.constant 0 : i32
    return %c0_i32, %c0_i32_0 : i32, i32
  }
  func.func @transform_6(%arg0: i32) -> (i32, i32) {
    %c0_i32 = arith.constant 0 : i32
    %c0_i32_0 = arith.constant 0 : i32
    %c0_i32_1 = arith.constant 0 : i32
    return %c0_i32, %c0_i32_0 : i32, i32
  }
  func.func @transform_7(%arg0: i32) -> (i32, i32) {
    %c0_i32 = arith.constant 0 : i32
    %c0_i32_0 = arith.constant 0 : i32
    return %arg0, %c0_i32 : i32, i32
  }
  func.func @transform_8(%arg0: i32) -> (i32, i32) {
    %c0_i32 = arith.constant 0 : i32
    %c0_i32_0 = arith.constant 0 : i32
    return %arg0, %c0_i32 : i32, i32
  }
}

</mosaic_0001>

<bundles_post_ra>
// kernel: tpu_custom_call.1
= control target key start
LH: loop header
LB: loop body
LE: loop exit
PB: predicated region body
PF: predicated region fallthrough
CT: control target
= control target key end

     0   :  { %14 = vsyncpa [#allocation3], 0  ;;  %vm43_vm0 = vcmask 1043456   ;;  %v400_v2 = vmov 0.0   ;;  %vm401_vm1 = vmmov 0   ;;  %vm39_vm2 = vcmask 31744   ;;  %s480_s0 = inlined_call_operand.vmem [shape: f32[8,4], index: 0, kind: input, shape index: {}]   ;;  %s481_s1 = inlined_call_operand.vmem [shape: f32[4,6], index: 1, kind: input, shape index: {}]   ;;  %s482_s2 = inlined_call_operand.vmem [shape: f32[1,6], index: 2, kind: input, shape index: {}]   ;;  %s483_s3 = inlined_call_operand.vmem [shape: f32[4,5], index: 3, kind: input, shape index: {}]   ;;  %s484_s4 = inlined_call_operand.vmem [shape: f32[1,5], index: 4, kind: input, shape index: {}]   ;;  %s485_s5 = inlined_call_operand.vmem [shape: f32[5,6], index: 5, kind: input, shape index: {}]   ;;  %s486_s6 = inlined_call_operand.vmem [shape: f32[1,6], index: 6, kind: input, shape index: {}]   ;;  %s487_s7 = inlined_call_operand.hbm [shape: f32[8,6], index: 7, kind: output, shape index: {0}]   ;;  %s488_s8 = inlined_call_operand.hbm [shape: f32[8,6], index: 8, kind: output, shape index: {1}]  }
   0x1   :  { %v119_v0 = vld [vmem:[%s483_s3] sm:$0xf]  ;;  %338 = vmatprep.subr.mxu1 %v400_v2  ;;  %340 = vmatprep.mubr.msk.f32.mxu1 %vm401_vm1, %v400_v2 }
   0x2   :  { %v30_v1 = vld [vmem:[%s480_s0] sm:$0xff] }
   0x3   :  { %15 = vsyncpa [#allocation5], 0  ;;  %339 = vmatpush3.msk.msra.mxu1 %vm43_vm0, %v119_v0  ;;  %333 = vmatprep.subr.mxu0 %v400_v2  ;;  %v31_v3 = vld [vmem:[%s481_s1] sm:$0xf]  ;;  %vm213_vm3 = vcmask 1044480   ;;  %vm209_vm4 = vcmask 39936  }
   0x4   :  { %341 = vmatmul.mubr.msk.f32.vlgmr.msra.gmra.mxu1 %vm39_vm2, %v30_v1  ;;  %335 = vmatprep.mubr.msk.f32.mxu0 %vm401_vm1, %v400_v2  ;;  %v201_v4 = vld [vmem:[%s485_s5] sm:$0x1f]  ;;  %vm117_vm5 = vcmask 48128   ;;  %s402_s13 = smov [#allocation2]  }
   0x5   :  { %334 = vmatpush3.msk.msra.mxu0 %vm43_vm0, %v31_v3  ;;  %v321_v5 = vld [vmem:[%s484_s4] ss:$0 sm:$0xff]  ;;  %s296_s14 = sshll.u32 %s402_s13, 4  ;;  %s297_s14 = int_to_ptr.vmem [resolvable:$true] %s296_s14 }
   0x6   :  { %336 = vmatmul.mubr.msk.f32.vlgmr.msra.gmra.mxu0 %vm39_vm2, %v30_v1  ;;  %343 = vmatprep.subr.mxu0 %v400_v2  ;;  %v318_v12 = vld [vmem:[%s482_s2] ss:$0 sm:$0xff]  ;;  %s356_s4 = scalar_lea.vmem %s297_s14, 128  ;;  %p361_p1 = scmp.lt.s32.totalorder %s297_s14, %s297_s14 }
   0x7   :  { %344 = vmatpush3.msk.msra.mxu0 %vm213_vm3, %v201_v4  ;;  %345 = vmatprep.mubr.msk.f32.mxu0 %vm401_vm1, %v400_v2  ;;  %p357_p0 = scmp.ne.s32.totalorder %s297_s14, %s356_s4  ;;  %p362_p2 = scmp.lt.s32.totalorder %s356_s4, %s356_s4 }
   0x9   :  { %p363_p3 = por %p362_p2, %p361_p1 }
   0xb   :  { %p364_p4 = pnand %p363_p3, %p357_p0 }
  0xc4   :  { %v196_v6 = vpop.f32.mrf.mxu1 }
  0xc5   :  { %v197_v7 = vadd.f32 %v321_v5, %v196_v6 }
  0xc6   :  { %v342_v8 = vpop.f32.mrf.mxu1  ;;  %v113_v10 = vpop.f32.mrf.mxu0 }
  0xc7   :  { %352 = vtanh.f32 %v197_v7  ;;  %v114_v13 = vadd.f32 %v318_v12, %v113_v10 }
  0xc8   :  { %v337_v11 = vpop.f32.mrf.mxu0 }
  0xc9   :  { %118 = vst.msk [vmem:[#allocation2] sm:$0xff] %vm117_vm5, %v114_v13 }
  0xd4   :  { %v353_v9 = vpop.eup %352 }
  0xd5   :  { %346 = vmatmul.mubr.msk.f32.vlgmr.msra.gmra.mxu0 %vm209_vm4, %v353_v9 }
  0xd6   :  { %367 = shalt.err (!%p364_p4)
}
  0xd7   :  { %299 = dma.vmem_to_hbm [thread:$0]  %s297_s14, 128, %s487_s7, [#allocation3]   ;;  %v324_v14 = vld [vmem:[%s486_s6] ss:$0 sm:$0xff] }
  0xd8   :  { %s403_s18 = smov [#allocation4]  }
  0xd9   :  { %s306_s19 = sshll.u32 %s403_s18, 4  ;;  %s307_s19 = int_to_ptr.vmem [resolvable:$true] %s306_s19 }
  0xda   :  { %s376_s20 = scalar_lea.vmem %s307_s19, 128  ;;  %p381_p6 = scmp.lt.s32.totalorder %s307_s19, %s307_s19 }
  0xdb   :  { %p377_p5 = scmp.ne.s32.totalorder %s307_s19, %s376_s20  ;;  %p382_p7 = scmp.lt.s32.totalorder %s376_s20, %s376_s20 }
  0xdd   :  { %p383_p8 = por %p382_p7, %p381_p6 }
  0xdf   :  { %p384_p9 = pnand %p383_p8, %p377_p5 }
 0x195   :  { %v283_v15 = vpop.f32.mrf.mxu0 }
 0x196   :  { %v284_v16 = vadd.f32 %v324_v14, %v283_v15 }
 0x197   :  { %v347_v17 = vpop.f32.mrf.mxu0 }
 0x198   :  { %v287_v18 = vmul.f32 1.442695, %v284_v16 }
 0x19a   :  { %354 = vpow2.f32 %v287_v18 }
 0x1a7   :  { %v355_v19 = vpop.eup %354 }
 0x1a8   :  { %289 = vst.msk [vmem:[#allocation4] sm:$0xff] %vm117_vm5, %v355_v19 }
 0x1a9   :  { %387 = shalt.err (!%p384_p9)
}
 0x1aa   :  { %309 = dma.vmem_to_hbm [thread:$0]  %s307_s19, 128, %s488_s8, [#allocation5]  }
 0x1ab   :  { %396 = dma.done.wait [#allocation3], 128  }
 0x1ac   :  { %397 = vsyncadd [#allocation3], 4294967168 }
 0x1ad   :  { %398 = dma.done.wait [#allocation5], 128  }
 0x1ae   :  { %399 = vsyncadd [#allocation5], 4294967168 }
 0x1af   :  { %316 = vsyncpa [#allocation3], 1 }
 0x1b0   :  { %317 = vsyncpa [#allocation5], 1 }

</bundles_post_ra>
